<compile_context>
chip_gen: v7x
topology: tpu7x:2x2x1
jax: 0.10.0
libtpu: 0.0.40
codegen_flags: <defaults>
</compile_context>

<pallas_src>
import functools

import numpy as np
import jax
import jax.numpy as jnp
from jax.experimental import pallas as pl
from jax.experimental.pallas import tpu as pltpu


def _round_up(x, m):
    return (x + m - 1) // m * m


# ------------------------- median selection networks ------------------------

def _med3(a, b, c):
    # median of 3 with 4 min/max ops
    return jnp.maximum(jnp.minimum(a, b), jnp.minimum(jnp.maximum(a, b), c))


def _med5(a, b, c, d, e):
    # median of 5 with 8 min/max ops: the smaller of {min(a,b), min(c,d)} and
    # the larger of {max(a,b), max(c,d)} can never be the median, so
    # med5(a..e) = med3(f, g, e) with the two survivors f, g below.
    f = jnp.maximum(jnp.minimum(a, b), jnp.minimum(c, d))
    g = jnp.minimum(jnp.maximum(a, b), jnp.maximum(c, d))
    return _med3(f, g, e)


def _median_of(windows):
    """Elementwise median of a list of same-shape arrays (VPU min/max network)."""
    elems = list(windows)
    k = len(elems)
    if k == 1:
        return elems[0]
    if k == 3:
        return _med3(*elems)
    if k == 5:
        return _med5(*elems)
    # general fallback: full sort network, then pick / average the middle
    for i in range(k):
        for j in range(k - 1 - i):
            a, b = elems[j], elems[j + 1]
            elems[j] = jnp.minimum(a, b)
            elems[j + 1] = jnp.maximum(a, b)
    if k % 2 == 1:
        return elems[k // 2]
    return 0.5 * (elems[k // 2 - 1] + elems[k // 2])


# --------------------------------- kernel ----------------------------------

def verti_hori_median_kernel(img_ref, out_ref, *, vertical_size, h_true, w_true):
    x = img_ref[...]                       # (Hp, Wp) one channel plane (padded)
    hp, wp = x.shape
    row_idx = jax.lax.broadcasted_iota(jnp.int32, (hp, wp), 0)
    col_idx = jax.lax.broadcasted_iota(jnp.int32, (hp, wp), 1)

    def row_windows(z, size):
        """z shifted by d rows (edge replicated at the TRUE extent) for each window offset."""
        pad = size // 2
        first = jnp.broadcast_to(z[0:1, :], z.shape)               # hoisted once per pass
        last = jnp.broadcast_to(z[h_true - 1:h_true, :], z.shape)
        outs = []
        for off in range(size):
            d = off - pad                                          # static python int
            if d == 0:
                outs.append(z)
                continue
            r = pltpu.roll(z, (-d) % hp, axis=0)    # r[i, :] = z[(i + d) % hp, :]  (XLU)
            if d > 0:
                r = jnp.where(row_idx >= h_true - d, last, r)
            else:
                r = jnp.where(row_idx < -d, first, r)
            outs.append(r)
        return outs

    def col_windows(z, size):
        pad = size // 2
        first = jnp.broadcast_to(z[:, 0:1], z.shape)
        last = jnp.broadcast_to(z[:, w_true - 1:w_true], z.shape)
        outs = []
        for off in range(size):
            d = off - pad
            if d == 0:
                outs.append(z)
                continue
            r = pltpu.roll(z, (-d) % wp, axis=1)    # r[:, j] = z[:, (j + d) % wp]
            if d > 0:
                r = jnp.where(col_idx >= w_true - d, last, r)
            else:
                r = jnp.where(col_idx < -d, first, r)
            outs.append(r)
        return outs

    # ---- vertical pass (per column) ----
    y = _median_of(row_windows(x, vertical_size))
    y = jnp.where(row_idx < 1, 0.0, pltpu.roll(y, 1, axis=0))      # shift down 1, zero top
    y = _median_of(row_windows(y, 3))

    # ---- horizontal pass (per row) ----
    y = _median_of(col_windows(y, vertical_size))
    y = jnp.where(col_idx < 1, 0.0, pltpu.roll(y, 1, axis=1))      # shift right 1, zero left
    y = _median_of(col_windows(y, 3))

    out_ref[...] = y


# --------------------------------- wrapper ----------------------------------

def verti_hori_median(img_hwc, mask, vertical_size):
    """img_hwc: (H, W, C) float32; mask: (H, W) (unused, as in the reference)."""
    del mask  # unused by the reference module as well
    H, W, C = img_hwc.shape
    Hc = H - 6
    x = jnp.transpose(img_hwc[3:-3, :, :], (2, 0, 1))              # (C, Hc, W)

    # pad to lane/sublane-aligned plane; true extents handled in-kernel by masks
    Hp = _round_up(Hc, 8)
    Wp = _round_up(W, 128)
    x = jnp.pad(x, ((0, 0), (0, Hp - Hc), (0, Wp - W)))

    kernel = functools.partial(
        verti_hori_median_kernel,
        vertical_size=int(vertical_size),
        h_true=int(Hc),
        w_true=int(W),
    )

    out = pl.pallas_call(
        kernel,
        out_shape=jax.ShapeDtypeStruct((C, Hp, Wp), x.dtype),
        grid=(C,),
        in_specs=[pl.BlockSpec((None, Hp, Wp), lambda c: (c, 0, 0))],
        out_specs=pl.BlockSpec((None, Hp, Wp), lambda c: (c, 0, 0)),
        compiler_params=pltpu.CompilerParams(
            dimension_semantics=("parallel",),
            vmem_limit_bytes=64 * 1024 * 1024,
        ),
    )(x)

    out = out[:, :Hc, :W]
    return jnp.transpose(out, (1, 2, 0))                           # back to (Hc, W, C)


# ---------------------------- numpy reference ------------------------------

def _median_filter_custom_np(data, size=3):
    padded = np.pad(data, pad_width=size // 2, mode='edge')
    out = np.zeros_like(data)
    for i in range(len(data)):
        out[i] = np.median(padded[i:i + size])
    return out


def _forward_ref_np(img, mask, vertical_size):
    medianed = img.copy()[3:-3, :, :]
    for col in range(img.shape[1]):
        for ch in range(img.shape[2]):
            col_data = img[:, col, ch][3:-3]
            f = _median_filter_custom_np(col_data, size=vertical_size)
            shifted = np.pad(f, (1, 0), mode='constant')[:-1]
            medianed[:, col, ch] = _median_filter_custom_np(shifted, size=3)
    for row in range(medianed.shape[0]):
        for ch in range(medianed.shape[2]):
            row_data = medianed[row, :, ch]
            f = _median_filter_custom_np(row_data, size=vertical_size)
            shifted = np.pad(f, (1, 0), mode='constant')[:-1]
            medianed[row, :, ch] = _median_filter_custom_np(shifted, size=3)
    return medianed


# ----------------------------------- main ----------------------------------

if __name__ == "__main__":
    key = jax.random.PRNGKey(0)
    k_img, k_mask = jax.random.split(key)

    H, W, C = 16, 16, 4
    vertical_size = 5

    img = jax.random.uniform(k_img, (H, W, C), dtype=jnp.float32)
    mask = (jax.random.uniform(k_mask, (H, W)) > 0.5).astype(jnp.float32)

    out = verti_hori_median(img, mask, vertical_size)
    out = jax.block_until_ready(out)

    ref = _forward_ref_np(np.asarray(img), np.asarray(mask), vertical_size)
    assert out.shape == ref.shape, (out.shape, ref.shape)
    assert np.allclose(np.asarray(out), ref, atol=1e-5), "mismatch vs numpy reference"

    print("KERNEL_OK")
</pallas_src>

<mosaic_0001>
module attributes {stable_mosaic.version = 11 : i64} {
  func.func @verti_hori_median_kernel(%arg0: i32, %arg1: memref<1x16x128xf32, #tpu.memory_space<vmem>>, %arg2: memref<1x16x128xf32, #tpu.memory_space<vmem>>) attributes {dimension_semantics = [#tpu.dimension_semantics<parallel>], iteration_bounds = array<i64: 4>, scalar_prefetch = 0 : i64, scratch_operands = 0 : i64, tpu.core_type = #tpu.core_type<tc>, window_params = [{transform_indices = @transform_0, window_bounds = array<i64: 1, 16, 128>}, {transform_indices = @transform_1, window_bounds = array<i64: 1, 16, 128>}]} {
    %c0 = arith.constant 0 : index
    %c0_0 = arith.constant 0 : index
    %c0_1 = arith.constant 0 : index
    %0 = vector.load %arg1[%c0, %c0_0, %c0_1] : memref<1x16x128xf32, #tpu.memory_space<vmem>>, vector<1x16x128xf32>
    %1 = vector.shape_cast %0 : vector<1x16x128xf32> to vector<16x128xf32>
    %2 = tpu.iota {dimensions = array<i32: 0>} : vector<16x128xi32>
    %3 = tpu.iota {dimensions = array<i32: 1>} : vector<16x128xi32>
    %4 = vector.extract_strided_slice %1 {offsets = [0, 0], sizes = [1, 128], strides = [1, 1]} : vector<16x128xf32> to vector<1x128xf32>
    %5 = vector.shape_cast %4 : vector<1x128xf32> to vector<1x128xf32>
    %6 = vector.broadcast %5 : vector<1x128xf32> to vector<16x128xf32>
    %7 = vector.extract_strided_slice %1 {offsets = [9, 0], sizes = [1, 128], strides = [1, 1]} : vector<16x128xf32> to vector<1x128xf32>
    %8 = vector.shape_cast %7 : vector<1x128xf32> to vector<1x128xf32>
    %9 = vector.broadcast %8 : vector<1x128xf32> to vector<16x128xf32>
    %c2_i32 = arith.constant 2 : i32
    %10 = tpu.dynamic_rotate %1 by %c2_i32 dim 0 : vector<16x128xf32>, i32 -> vector<16x128xf32>
    %c2_i32_2 = arith.constant 2 : i32
    %11 = vector.broadcast %c2_i32_2 : i32 to vector<16x128xi32>
    %12 = arith.cmpi slt, %2, %11 : vector<16x128xi32>
    %13 = arith.select %12, %6, %10 : vector<16x128xi1>, vector<16x128xf32>
    %c1_i32 = arith.constant 1 : i32
    %14 = tpu.dynamic_rotate %1 by %c1_i32 dim 0 : vector<16x128xf32>, i32 -> vector<16x128xf32>
    %c1_i32_3 = arith.constant 1 : i32
    %15 = vector.broadcast %c1_i32_3 : i32 to vector<16x128xi32>
    %16 = arith.cmpi slt, %2, %15 : vector<16x128xi32>
    %17 = arith.select %16, %6, %14 : vector<16x128xi1>, vector<16x128xf32>
    %c15_i32 = arith.constant 15 : i32
    %18 = tpu.dynamic_rotate %1 by %c15_i32 dim 0 : vector<16x128xf32>, i32 -> vector<16x128xf32>
    %c9_i32 = arith.constant 9 : i32
    %19 = vector.broadcast %c9_i32 : i32 to vector<16x128xi32>
    %20 = arith.cmpi sge, %2, %19 : vector<16x128xi32>
    %21 = arith.select %20, %9, %18 : vector<16x128xi1>, vector<16x128xf32>
    %c14_i32 = arith.constant 14 : i32
    %22 = tpu.dynamic_rotate %1 by %c14_i32 dim 0 : vector<16x128xf32>, i32 -> vector<16x128xf32>
    %c8_i32 = arith.constant 8 : i32
    %23 = vector.broadcast %c8_i32 : i32 to vector<16x128xi32>
    %24 = arith.cmpi sge, %2, %23 : vector<16x128xi32>
    %25 = arith.select %24, %9, %22 : vector<16x128xi1>, vector<16x128xf32>
    %26 = arith.minimumf %13, %17 : vector<16x128xf32>
    %27 = arith.minimumf %1, %21 : vector<16x128xf32>
    %28 = arith.maximumf %26, %27 : vector<16x128xf32>
    %29 = arith.maximumf %13, %17 : vector<16x128xf32>
    %30 = arith.maximumf %1, %21 : vector<16x128xf32>
    %31 = arith.minimumf %29, %30 : vector<16x128xf32>
    %32 = arith.minimumf %28, %31 : vector<16x128xf32>
    %33 = arith.maximumf %28, %31 : vector<16x128xf32>
    %34 = arith.minimumf %33, %25 : vector<16x128xf32>
    %35 = arith.maximumf %32, %34 : vector<16x128xf32>
    %c1_i32_4 = arith.constant 1 : i32
    %36 = vector.broadcast %c1_i32_4 : i32 to vector<16x128xi32>
    %37 = arith.cmpi slt, %2, %36 : vector<16x128xi32>
    %c1_i32_5 = arith.constant 1 : i32
    %38 = tpu.dynamic_rotate %35 by %c1_i32_5 dim 0 : vector<16x128xf32>, i32 -> vector<16x128xf32>
    %cst = arith.constant 0.000000e+00 : f32
    %39 = vector.broadcast %cst : f32 to vector<16x128xf32>
    %40 = arith.select %37, %39, %38 : vector<16x128xi1>, vector<16x128xf32>
    %41 = vector.extract_strided_slice %40 {offsets = [0, 0], sizes = [1, 128], strides = [1, 1]} : vector<16x128xf32> to vector<1x128xf32>
    %42 = vector.shape_cast %41 : vector<1x128xf32> to vector<1x128xf32>
    %43 = vector.broadcast %42 : vector<1x128xf32> to vector<16x128xf32>
    %44 = vector.extract_strided_slice %40 {offsets = [9, 0], sizes = [1, 128], strides = [1, 1]} : vector<16x128xf32> to vector<1x128xf32>
    %45 = vector.shape_cast %44 : vector<1x128xf32> to vector<1x128xf32>
    %46 = vector.broadcast %45 : vector<1x128xf32> to vector<16x128xf32>
    %c1_i32_6 = arith.constant 1 : i32
    %47 = tpu.dynamic_rotate %40 by %c1_i32_6 dim 0 : vector<16x128xf32>, i32 -> vector<16x128xf32>
    %c1_i32_7 = arith.constant 1 : i32
    %48 = vector.broadcast %c1_i32_7 : i32 to vector<16x128xi32>
    %49 = arith.cmpi slt, %2, %48 : vector<16x128xi32>
    %50 = arith.select %49, %43, %47 : vector<16x128xi1>, vector<16x128xf32>
    %c15_i32_8 = arith.constant 15 : i32
    %51 = tpu.dynamic_rotate %40 by %c15_i32_8 dim 0 : vector<16x128xf32>, i32 -> vector<16x128xf32>
    %c9_i32_9 = arith.constant 9 : i32
    %52 = vector.broadcast %c9_i32_9 : i32 to vector<16x128xi32>
    %53 = arith.cmpi sge, %2, %52 : vector<16x128xi32>
    %54 = arith.select %53, %46, %51 : vector<16x128xi1>, vector<16x128xf32>
    %55 = arith.minimumf %50, %40 : vector<16x128xf32>
    %56 = arith.maximumf %50, %40 : vector<16x128xf32>
    %57 = arith.minimumf %56, %54 : vector<16x128xf32>
    %58 = arith.maximumf %55, %57 : vector<16x128xf32>
    %59 = vector.extract_strided_slice %58 {offsets = [0, 0], sizes = [16, 1], strides = [1, 1]} : vector<16x128xf32> to vector<16x1xf32>
    %60 = vector.shape_cast %59 : vector<16x1xf32> to vector<16x1xf32>
    %61 = vector.broadcast %60 : vector<16x1xf32> to vector<16x128xf32>
    %62 = vector.extract_strided_slice %58 {offsets = [0, 15], sizes = [16, 1], strides = [1, 1]} : vector<16x128xf32> to vector<16x1xf32>
    %63 = vector.shape_cast %62 : vector<16x1xf32> to vector<16x1xf32>
    %64 = vector.broadcast %63 : vector<16x1xf32> to vector<16x128xf32>
    %c2_i32_10 = arith.constant 2 : i32
    %65 = tpu.dynamic_rotate %58 by %c2_i32_10 dim 1 : vector<16x128xf32>, i32 -> vector<16x128xf32>
    %c2_i32_11 = arith.constant 2 : i32
    %66 = vector.broadcast %c2_i32_11 : i32 to vector<16x128xi32>
    %67 = arith.cmpi slt, %3, %66 : vector<16x128xi32>
    %68 = arith.select %67, %61, %65 : vector<16x128xi1>, vector<16x128xf32>
    %c1_i32_12 = arith.constant 1 : i32
    %69 = tpu.dynamic_rotate %58 by %c1_i32_12 dim 1 : vector<16x128xf32>, i32 -> vector<16x128xf32>
    %c1_i32_13 = arith.constant 1 : i32
    %70 = vector.broadcast %c1_i32_13 : i32 to vector<16x128xi32>
    %71 = arith.cmpi slt, %3, %70 : vector<16x128xi32>
    %72 = arith.select %71, %61, %69 : vector<16x128xi1>, vector<16x128xf32>
    %c127_i32 = arith.constant 127 : i32
    %73 = tpu.dynamic_rotate %58 by %c127_i32 dim 1 : vector<16x128xf32>, i32 -> vector<16x128xf32>
    %c15_i32_14 = arith.constant 15 : i32
    %74 = vector.broadcast %c15_i32_14 : i32 to vector<16x128xi32>
    %75 = arith.cmpi sge, %3, %74 : vector<16x128xi32>
    %76 = arith.select %75, %64, %73 : vector<16x128xi1>, vector<16x128xf32>
    %c126_i32 = arith.constant 126 : i32
    %77 = tpu.dynamic_rotate %58 by %c126_i32 dim 1 : vector<16x128xf32>, i32 -> vector<16x128xf32>
    %c14_i32_15 = arith.constant 14 : i32
    %78 = vector.broadcast %c14_i32_15 : i32 to vector<16x128xi32>
    %79 = arith.cmpi sge, %3, %78 : vector<16x128xi32>
    %80 = arith.select %79, %64, %77 : vector<16x128xi1>, vector<16x128xf32>
    %81 = arith.minimumf %68, %72 : vector<16x128xf32>
    %82 = arith.minimumf %58, %76 : vector<16x128xf32>
    %83 = arith.maximumf %81, %82 : vector<16x128xf32>
    %84 = arith.maximumf %68, %72 : vector<16x128xf32>
    %85 = arith.maximumf %58, %76 : vector<16x128xf32>
    %86 = arith.minimumf %84, %85 : vector<16x128xf32>
    %87 = arith.minimumf %83, %86 : vector<16x128xf32>
    %88 = arith.maximumf %83, %86 : vector<16x128xf32>
    %89 = arith.minimumf %88, %80 : vector<16x128xf32>
    %90 = arith.maximumf %87, %89 : vector<16x128xf32>
    %c1_i32_16 = arith.constant 1 : i32
    %91 = vector.broadcast %c1_i32_16 : i32 to vector<16x128xi32>
    %92 = arith.cmpi slt, %3, %91 : vector<16x128xi32>
    %c1_i32_17 = arith.constant 1 : i32
    %93 = tpu.dynamic_rotate %90 by %c1_i32_17 dim 1 : vector<16x128xf32>, i32 -> vector<16x128xf32>
    %cst_18 = arith.constant 0.000000e+00 : f32
    %94 = vector.broadcast %cst_18 : f32 to vector<16x128xf32>
    %95 = arith.select %92, %94, %93 : vector<16x128xi1>, vector<16x128xf32>
    %96 = vector.extract_strided_slice %95 {offsets = [0, 0], sizes = [16, 1], strides = [1, 1]} : vector<16x128xf32> to vector<16x1xf32>
    %97 = vector.shape_cast %96 : vector<16x1xf32> to vector<16x1xf32>
    %98 = vector.broadcast %97 : vector<16x1xf32> to vector<16x128xf32>
    %99 = vector.extract_strided_slice %95 {offsets = [0, 15], sizes = [16, 1], strides = [1, 1]} : vector<16x128xf32> to vector<16x1xf32>
    %100 = vector.shape_cast %99 : vector<16x1xf32> to vector<16x1xf32>
    %101 = vector.broadcast %100 : vector<16x1xf32> to vector<16x128xf32>
    %c1_i32_19 = arith.constant 1 : i32
    %102 = tpu.dynamic_rotate %95 by %c1_i32_19 dim 1 : vector<16x128xf32>, i32 -> vector<16x128xf32>
    %c1_i32_20 = arith.constant 1 : i32
    %103 = vector.broadcast %c1_i32_20 : i32 to vector<16x128xi32>
    %104 = arith.cmpi slt, %3, %103 : vector<16x128xi32>
    %105 = arith.select %104, %98, %102 : vector<16x128xi1>, vector<16x128xf32>
    %c127_i32_21 = arith.constant 127 : i32
    %106 = tpu.dynamic_rotate %95 by %c127_i32_21 dim 1 : vector<16x128xf32>, i32 -> vector<16x128xf32>
    %c15_i32_22 = arith.constant 15 : i32
    %107 = vector.broadcast %c15_i32_22 : i32 to vector<16x128xi32>
    %108 = arith.cmpi sge, %3, %107 : vector<16x128xi32>
    %109 = arith.select %108, %101, %106 : vector<16x128xi1>, vector<16x128xf32>
    %110 = arith.minimumf %105, %95 : vector<16x128xf32>
    %111 = arith.maximumf %105, %95 : vector<16x128xf32>
    %112 = arith.minimumf %111, %109 : vector<16x128xf32>
    %113 = arith.maximumf %110, %112 : vector<16x128xf32>
    %c0_23 = arith.constant 0 : index
    %c0_24 = arith.constant 0 : index
    %c0_25 = arith.constant 0 : index
    %114 = vector.load %arg2[%c0_23, %c0_24, %c0_25] : memref<1x16x128xf32, #tpu.memory_space<vmem>>, vector<1x16x128xf32>
    %115 = vector.shape_cast %114 : vector<1x16x128xf32> to vector<16x128xf32>
    %116 = vector.shape_cast %113 : vector<16x128xf32> to vector<1x16x128xf32>
    tpu.vector_store %arg2[%c0_23, %c0_24, %c0_25], %116 {strides = array<i32>} : memref<1x16x128xf32, #tpu.memory_space<vmem>>, vector<1x16x128xf32>,
    return
  }
  func.func @transform_0(%arg0: i32) -> (i32, i32, i32) {
    %c0_i32 = arith.constant 0 : i32
    %c0_i32_0 = arith.constant 0 : i32
    %c0_i32_1 = arith.constant 0 : i32
    return %arg0, %c0_i32, %c0_i32_0 : i32, i32, i32
  }
  func.func @transform_1(%arg0: i32) -> (i32, i32, i32) {
    %c0_i32 = arith.constant 0 : i32
    %c0_i32_0 = arith.constant 0 : i32
    %c0_i32_1 = arith.constant 0 : i32
    return %arg0, %c0_i32, %c0_i32_0 : i32, i32, i32
  }
}

</mosaic_0001>

<bundles_post_ra>
// kernel: tpu_custom_call.1
= control target key start
LH: loop header
LB: loop body
LE: loop exit
PB: predicated region body
PF: predicated region fallthrough
CT: control target
= control target key end

     0   :  { %6 = vsyncpa [#allocation3], 0  ;;  %s891_s0 = inlined_call_operand.hbm [shape: f32[4,16,128], index: 0, kind: input, shape index: {}]   ;;  %s892_s1 = inlined_call_operand.hbm [shape: f32[4,16,128], index: 1, kind: output, shape index: {}]  }
   0x1   :  { %8 = vsyncpa [#allocation3 + $0x1], 0 }
   0x2   :  { %9 = vsyncpa [#allocation4], 0 }
   0x3   :  { %11 = vsyncpa [#allocation4 + $0x1], 0  ;;  %s634_s6 = smov 0   ;;  %s636_s7 = smov 0  }
   0x4   :  { %s638_s8 = smov 0   ;;  %s640_s9 = smov 0  }
   0x5 LB: > { %s655_s10 = sadd.s32 4294967295, %s610_s9   ;;  %s437_s11 = sadd.s32 4294967294, %s610_s9   ;;  %s610_s9 = sphi %s640_s9, %s904_s9   ;;  %s606_s8 = sphi %s638_s8, %s903_s8   ;;  %s602_s7 = sphi %s636_s7, %s902_s7   ;;  %s598_s6 = sphi %s634_s6, %s901_s6  }
   0x6   : > { %s659_s12 = sadd.s32 1, %s610_s9   ;;  %s24_s13 = sadd.s32 1, %s606_s8 }
   0x7   : > { %s21_s14 = ssub.s32 %s610_s9, %s659_s12  ;;  %p31_p0 = scmp.ne.s32.totalorder %s606_s8, %s602_s7 }
   0x8   : > { %p22_p1 = scmp.eq.s32.totalorder %s21_s14, 0  ;;  %p32_p2 = scmp.eq.s32.totalorder %s610_s9, 0 }
   0x9   : > { %p37_p3 = scmp.ne.s32.totalorder %s602_s7, %s598_s6  ;;  %p38_p4 = scmp.eq.s32.totalorder %s655_s10, 0 }
   0xa   : > { %s671_s15 = scalar_select %p22_p1, %s606_s8, %s24_s13  }
   0xb   : > { %p673_p5 = por %p32_p2, %p31_p0  ;;  %p677_p6 = por %p38_p4, %p37_p3 }
   0xc   : > { %p61_p7 = scmp.eq.s32.totalorder %s655_s10, 3  ;;  %p67_p8 = scmp.eq.s32.totalorder %s437_s11, 3 }
   0xd   : > { %p465_p9 = scmp.lt.s32.totalorder %s610_s9, 4  ;;  %s87_s20 = sand.u32 1, %s606_s8  }
   0xe   : > { %p683_p10 = por %p61_p7, %p31_p0  ;;  %p687_p11 = por %p67_p8, %p37_p3 }
   0xf   : > { %s451_s21 = sshll.u32 %s610_s9, 8  ;;  %s440_s22 = sshll.u32 %s87_s20, 4 }
  0x10   : > { %s896_s18 = scalar_select %p683_p10, 1, 0 }
  0x11   : > { %s897_s19 = scalar_select %p687_p11, 1, 0 }
  0x12   : > { %s696_s25 = scalar_lea.hbm %s891_s0, %s451_s21  ;;  %s91_s26 = scalar_lea.vmem [#allocation2], %s440_s22 }
  0x13   : > { %s98_s27 = sshll.u32 %s91_s26, 4  ;;  %p700_p12 = pnand %p465_p9, %p673_p5  ;;  %s704_s27 = int_to_ptr.vmem [resolvable:$true] %s98_s27 }
  0x14   : > { %s706_s29 = scalar_lea.sflag [#allocation3], %s87_s20  ;;  %s514_s30 = scalar_lea.hbm %s696_s25, 256 }
  0x15   : > { %p515_p13 = scmp.ne.s32.totalorder %s696_s25, %s514_s30  ;;  %p516_p0 = pneg %p700_p12 }
  0x16   : > { %s519_s4 = scalar_lea.hbm %s891_s0, 1024  ;;  %p520_p3 = scmp.lt.u32.totalorder %s696_s25, %s891_s0 }
  0x17   : > { %p517_p1 = pnand %p516_p0, %p515_p13  ;;  %p521_p4 = scmp.lt.u32.totalorder %s519_s4, %s514_s30 }
  0x18   : > { %p523_p7 = scmp.lt.u32.totalorder %s514_s30, %s696_s25 }
  0x19   : > { %p518_p2 = pneg %p517_p1  ;;  %p522_p5 = por %p521_p4, %p520_p3 }
  0x1b   : > { %p524_p8 = por %p523_p7, %p522_p5 }
  0x1d   : > { %p525_p9 = pnand %p524_p8, %p518_p2 }
  0x1f   : > { %528 = shalt.err (!%p525_p9)
}
  0x20   : > { %s529_s13 = scalar_lea.vmem %s704_s27, 256  ;;  %s612_s14 = smov [#allocation2]  }
  0x21   : > { %p530_p13 = scmp.ne.s32.totalorder %s704_s27, %s529_s13  ;;  %s534_s16 = sshll.u32 %s612_s14, 4  ;;  %s535_s16 = int_to_ptr.vmem [resolvable:$false] %s534_s16 }
  0x22   : > { %s536_s20 = scalar_lea.vmem %s535_s16, 512  ;;  %p537_p10 = scmp.lt.s32.totalorder %s704_s27, %s535_s16 }
  0x23   : > { %p532_p1 = pnand %p530_p13, %p516_p0  ;;  %p538_p3 = scmp.lt.s32.totalorder %s536_s20, %s529_s13 }
  0x25   : > { %p533_p11 = pneg %p532_p1  ;;  %p539_p4 = por %p538_p3, %p537_p10 }
  0x27   : > { %p540_p5 = pnand %p539_p4, %p533_p11 }
  0x29   : > { %543 = shalt.err (!%p540_p5)
}
  0x2a   : > { %s613_s21 = smov 128   ;;  %s614_s22 = smov 8  }
  0x2b   : > { %460 = dma.hbm_to_vmem [thread:$0]  (!%p700_p12), %s696_s25, 256, %s704_s27, %s706_s29, %s613_s21, %s613_s21, %s614_s22  }
  0x2c   : > { %p443_p0 = scmp.ge.s32.totalorder %s610_s9, 1  ;;  %p106_p2 = scmp.lt.s32.totalorder %s610_s9, 5 }
  0x2e   : > { %p107_p7 = pnand %p443_p0, %p106_p2 }
  0x2f   : > { %s737_s23 = sand.u32 (!%p107_p7), 1, %s602_s7  }
  0x30   : > { %110 = sbr.rel (%p107_p7) target bundleno = 521 (0x209), region = 24  ;;  %s444_s24 = sshll.u32 (!%p107_p7), %s737_s23, 4 }
  0x31   : > { %s113_s26 = scalar_lea.sflag (!%p107_p7), [#allocation3], %s737_s23  ;;  %s116_s30 = scalar_lea.vmem (!%p107_p7), [#allocation2], %s444_s24 }
  0x37   : > { %589 = dma.done.wait (%p677_p6), %s113_s26, 256  }
  0x38   : > { %591 = vsyncadd (%p677_p6), %s113_s26, 4294967040  ;;  %v137_v0 = vlaneseq  ;;  %v615_v1 = vmov 15   ;;  %v616_v2 = vmov 0   ;;  %v135_v7 = vld [vmem:[%s116_s30] sm:$0xff]  ;;  %v136_v8 = vld [vmem:[%s116_s30 + $0x8] sm:$0xff]  ;;  %s617_s17 = smov 2  }
  0x39   : > { %510 = vset.pattern.permute.xlu1 %v615_v1  ;;  %509 = vset.pattern.permute.xlu0 %v616_v2  ;;  %v150_v11 = vrot.slane %v135_v7, 6  ;;  %v151_v12 = vrot.slane %v136_v8, 6  ;;  %v158_v13 = vrot.slane %v135_v7, 7  ;;  %v159_v14 = vrot.slane %v136_v8, 7  ;;  %s618_s25 = smov 1   ;;  %s619_s27 = smov 127  }
  0x3a   : > { %v750_v3 = vshrl.u32 %v137_v0, 7  ;;  %v166_v15 = vrot.slane %v135_v7, 1  ;;  %v167_v16 = vrot.slane %v136_v8, 1  ;;  %v175_v19 = vrot.slane %v135_v7, 2  ;;  %s620_s28 = smov 126   ;;  %s134_s29 = scalar_lea.vmem [#allocation5], %s444_s24 }
  0x3b   : > { %v176_v26 = vrot.slane %v136_v8, 2  ;;  %s364_s2 = sshll.u32 %s134_s29, 4  ;;  %s452_s3 = sshll.u32 %s655_s10, 8  ;;  %s843_s2 = int_to_ptr.vmem [resolvable:$true] %s364_s2 }
  0x3c   : > { %v144_v4 = vsub.s32 0, %v750_v3  ;;  %v148_v5 = vsub.s32 1, %v750_v3  ;;  %v755_v6 = vadd.s32 8, %v750_v3  ;;  %vm152_vm0 = vcmp.lt.s32.totalorder %v750_v3, 2  ;;  %s848_s10 = scalar_lea.hbm %s892_s1, %s452_s3  ;;  %s351_s11 = scalar_lea.sflag [#allocation4], %s737_s23 }
  0x3d   : > { %vm160_vm1 = vcmp.lt.s32.totalorder %v750_v3, 1  ;;  %vm168_vm2 = vcmp.lt.s32.totalorder %v750_v3, 7  ;;  %vm177_vm3 = vcmp.lt.s32.totalorder %v750_v3, 6  ;;  %v153_v17 = vsel %vm152_vm0, %v150_v11, %v151_v12  ;;  %s544_s13 = scalar_lea.vmem %s843_s2, 256  ;;  %p899_p10 = scmp.ne.s32.totalorder %s896_s18, 0 }
  0x3e   : > { %v145_v9 = vrot.slane %v135_v7, %v144_v4  ;;  %v149_v10 = vrot.slane %v136_v8, %v148_v5  ;;  %v154_v18 = vsel %vm152_vm0, %v151_v12, %v150_v11  ;;  %vm172_vm4 = vcmp.ge.s32.totalorder %v755_v6, 9  ;;  %p545_p6 = scmp.ne.s32.totalorder %s843_s2, %s544_s13  ;;  %s621_s14 = smov [#allocation5]  }
  0x3f   : > { %v161_v21 = vsel %vm160_vm1, %v158_v13, %v159_v14  ;;  %v162_v22 = vsel %vm160_vm1, %v159_v14, %v158_v13  ;;  %v169_v23 = vsel %vm168_vm2, %v166_v15, %v167_v16  ;;  %v170_v25 = vsel %vm168_vm2, %v167_v16, %v166_v15  ;;  %s548_s16 = sshll.u32 %s621_s14, 4  ;;  %s549_s16 = int_to_ptr.vmem [resolvable:$false] %s548_s16 }
  0x40   : > { %v156_v20 = vsel %vm152_vm0, %v145_v9, %v154_v18  ;;  %v164_v24 = vsel %vm160_vm1, %v145_v9, %v162_v22  ;;  %v185_v27 = vmin.f32 %v153_v17, %v161_v21  ;;  %v174_v28 = vsel %vm172_vm4, %v149_v10, %v170_v25  ;;  %p546_p11 = pnand %p545_p6, %p899_p10  ;;  %s550_s20 = scalar_lea.vmem %s549_s16, 512 }
  0x41   : > { %v184_v29 = vmin.f32 %v156_v20, %v164_v24  ;;  %v186_v30 = vmin.f32 %v135_v7, %v169_v23  ;;  %v190_v31 = vmax.f32 %v156_v20, %v164_v24  ;;  %v187_v32 = vmin.f32 %v136_v8, %v174_v28  ;;  %p551_p8 = scmp.lt.s32.totalorder %s843_s2, %s549_s16  ;;  %p552_p9 = scmp.lt.s32.totalorder %s550_s20, %s544_s13 }
  0x42   : > { %v191_v33 = vmax.f32 %v153_v17, %v161_v21  ;;  %v192_v34 = vmax.f32 %v135_v7, %v169_v23  ;;  %v193_v35 = vmax.f32 %v136_v8, %v174_v28  ;;  %v178_v40 = vsel %vm177_vm3, %v175_v19, %v176_v26  ;;  %p547_p12 = pneg %p546_p11 }
  0x43   : > { %v188_v36 = vmax.f32 %v184_v29, %v186_v30  ;;  %v189_v37 = vmax.f32 %v185_v27, %v187_v32  ;;  %v806_v17 = vand.u32 127, %v137_v0  ;;  %p553_p13 = por %p552_p9, %p551_p8 }
  0x44   : > { %v194_v38 = vmin.f32 %v190_v31, %v192_v34  ;;  %v195_v39 = vmin.f32 %v191_v33, %v193_v35 }
  0x45   : > { %vm267_vm5 = vcmp.lt.s32.totalorder %v806_v17, 1  ;;  %vm260_vm6 = vcmp.lt.s32.totalorder %v806_v17, 2  ;;  %vm274_vm7 = vcmp.ge.s32.totalorder %v806_v17, 15  ;;  %vm281_vm8 = vcmp.ge.s32.totalorder %v806_v17, 14  ;;  %p554_p1 = pnand %p553_p13, %p547_p12 }
  0x46   : > { %v196_v41 = vmin.f32 %v188_v36, %v194_v38  ;;  %v197_v42 = vmin.f32 %v189_v37, %v195_v39  ;;  %v198_v43 = vmax.f32 %v188_v36, %v194_v38  ;;  %v199_v44 = vmax.f32 %v189_v37, %v195_v39 }
  0x48   : > { %v200_v45 = vmin.f32 %v198_v43, %v178_v40  ;;  %v201_v46 = vmin.f32 %v199_v44, %v149_v10 }
  0x4a   : > { %v202_v47 = vmax.f32 %v196_v41, %v200_v45  ;;  %v203_v48 = vmax.f32 %v197_v42, %v201_v46 }
  0x4c   : > { %v204_v49 = vrot.slane %v202_v47, 7  ;;  %v205_v50 = vrot.slane %v203_v48, 7 }
  0x4e   : > { %v206_v51 = vsel %vm160_vm1, %v204_v49, %v205_v50  ;;  %v207_v52 = vsel %vm160_vm1, %v205_v50, %v204_v49 }
  0x4f   : > { %v208_v53 = vsel %vm160_vm1, 0.0, %v207_v52  ;;  %v217_v54 = vrot.slane %v206_v51, %v148_v5  ;;  %v219_v55 = vrot.slane %v206_v51, 7  ;;  %v225_v56 = vrot.slane %v206_v51, 1 }
  0x50   : > { %v218_v57 = vrot.slane %v208_v53, 7  ;;  %v224_v58 = vrot.slane %v208_v53, 1  ;;  %v213_v59 = vrot.slane %v208_v53, %v144_v4 }
  0x52   : > { %v220_v60 = vsel %vm160_vm1, %v218_v57, %v219_v55  ;;  %v227_v61 = vsel %vm168_vm2, %v225_v56, %v224_v58  ;;  %v221_v62 = vsel %vm160_vm1, %v219_v55, %v218_v57  ;;  %v226_v63 = vsel %vm168_vm2, %v224_v58, %v225_v56 }
  0x53   : > { %v229_v5 = vsel %vm172_vm4, %v217_v54, %v227_v61  ;;  %v231_v7 = vmin.f32 %v220_v60, %v206_v51  ;;  %v233_v8 = vmax.f32 %v220_v60, %v206_v51  ;;  %v222_v4 = vsel %vm160_vm1, %v213_v59, %v221_v62 }
  0x54   : > { %v232_v9 = vmax.f32 %v222_v4, %v208_v53  ;;  %v230_v11 = vmin.f32 %v222_v4, %v208_v53 }
  0x55   : > { %v235_v10 = vmin.f32 %v233_v8, %v229_v5 }
  0x56   : > { %v234_v12 = vmin.f32 %v232_v9, %v226_v63 }
  0x57   : > { %v237_v13 = vmax.f32 %v231_v7, %v235_v10 }
  0x58   : > { %v236_v14 = vmax.f32 %v230_v11, %v234_v12 }
  0x59   : > { %253 = vperm.xlu1 %510, %v237_v13   ;;  %245 = vperm.xlu0 %509, %v237_v13  }
  0x5d   : > { %258 = vrot.lane.b32.xlu1 %v237_v13, %s617_s17  ;;  %240 = vperm.xlu0 %509, %v236_v14  }
  0x61   : > { %249 = vperm.xlu1 %510, %v236_v14   ;;  %256 = vrot.lane.b32.xlu0 %v236_v14, %s617_s17 }
  0x65   : > { %265 = vrot.lane.b32.xlu1 %v237_v13, %s618_s25  ;;  %263 = vrot.lane.b32.xlu0 %v236_v14, %s618_s25 }
  0x66   : > { %511 = vset.pattern.permute.xlu1 %v616_v2 }
  0x69   : > { %272 = vrot.lane.b32.xlu1 %v237_v13, %s619_s27  ;;  %270 = vrot.lane.b32.xlu0 %v236_v14, %s619_s27 }
  0x6d   : > { %279 = vrot.lane.b32.xlu1 %v237_v13, %s620_s28  ;;  %277 = vrot.lane.b32.xlu0 %v236_v14, %s620_s28 }
  0xd8   : > { %v254_v3 = vpop.permute.xlu1 %253  ;;  %v246_v6 = vpop.permute.xlu0 %245 }
  0xdc   : > { %v259_v15 = vpop.permute.xlu1 %258  ;;  %v241_v16 = vpop.permute.xlu0 %240 }
  0xdd   : > { %v262_v23 = vsel %vm260_vm6, %v246_v6, %v259_v15 }
  0xe0   : > { %v250_v18 = vpop.permute.xlu1 %249  ;;  %v257_v19 = vpop.permute.xlu0 %256 }
  0xe1   : > { %v261_v24 = vsel %vm260_vm6, %v241_v16, %v257_v19 }
  0xe4   : > { %v266_v2 = vpop.permute.xlu1 %265  ;;  %v264_v20 = vpop.permute.xlu0 %263 }
  0xe5   : > { %v269_v21 = vsel %vm267_vm5, %v246_v6, %v266_v2  ;;  %v268_v22 = vsel %vm267_vm5, %v241_v16, %v264_v20 }
  0xe6   : > { %v285_v0 = vmin.f32 %v262_v23, %v269_v21  ;;  %v291_v25 = vmax.f32 %v262_v23, %v269_v21  ;;  %v284_v28 = vmin.f32 %v261_v24, %v268_v22  ;;  %v290_v29 = vmax.f32 %v261_v24, %v268_v22 }
  0xe8   : > { %v273_v26 = vpop.permute.xlu1 %272  ;;  %v271_v27 = vpop.permute.xlu0 %270 }
  0xe9   : > { %v276_v30 = vsel %vm274_vm7, %v254_v3, %v273_v26  ;;  %v275_v31 = vsel %vm274_vm7, %v250_v18, %v271_v27 }
  0xea   : > { %v287_v32 = vmin.f32 %v237_v13, %v276_v30  ;;  %v293_v33 = vmax.f32 %v237_v13, %v276_v30  ;;  %v286_v34 = vmin.f32 %v236_v14, %v275_v31  ;;  %v292_v35 = vmax.f32 %v236_v14, %v275_v31 }
  0xec   : > { %v289_v36 = vmax.f32 %v285_v0, %v287_v32  ;;  %v295_v37 = vmin.f32 %v291_v25, %v293_v33  ;;  %v288_v38 = vmax.f32 %v284_v28, %v286_v34  ;;  %v294_v39 = vmin.f32 %v290_v29, %v292_v35  ;;  %v280_v40 = vpop.permute.xlu1 %279  ;;  %v278_v41 = vpop.permute.xlu0 %277 }
  0xed   : > { %v283_v44 = vsel %vm281_vm8, %v254_v3, %v280_v40  ;;  %v282_v45 = vsel %vm281_vm8, %v250_v18, %v278_v41 }
  0xee   : > { %v299_v42 = vmax.f32 %v289_v36, %v295_v37  ;;  %v298_v43 = vmax.f32 %v288_v38, %v294_v39  ;;  %v297_v48 = vmin.f32 %v289_v36, %v295_v37  ;;  %v296_v49 = vmin.f32 %v288_v38, %v294_v39 }
  0xf0   : > { %v301_v46 = vmin.f32 %v299_v42, %v283_v44  ;;  %v300_v47 = vmin.f32 %v298_v43, %v282_v45 }
  0xf2   : > { %v303_v50 = vmax.f32 %v297_v48, %v301_v46  ;;  %v302_v51 = vmax.f32 %v296_v49, %v300_v47 }
  0xf4   : > { %306 = vrot.lane.b32.xlu1 %v303_v50, %s618_s25  ;;  %304 = vrot.lane.b32.xlu0 %v302_v51, %s618_s25 }
 0x166   : > { %v307_v52 = vpop.permute.xlu1 %306  ;;  %v305_v54 = vpop.permute.xlu0 %304 }
 0x167   : > { %v309_v53 = vsel %vm267_vm5, 0.0, %v307_v52  ;;  %v308_v55 = vsel %vm267_vm5, 0.0, %v305_v54 }
 0x168   : > { %317 = vperm.xlu1 %511, %v309_v53   ;;  %330 = vrot.lane.b32.xlu0 %v309_v53, %s618_s25 }
 0x16c   : > { %512 = vset.pattern.permute.xlu1 %v615_v1  ;;  %312 = vperm.xlu0 %509, %v308_v55  }
 0x16d   : > { %325 = vperm.xlu1 %512, %v309_v53  }
 0x170   : > { %513 = vset.pattern.permute.xlu0 %v615_v1 }
 0x171   : > { %328 = vrot.lane.b32.xlu1 %v308_v55, %s618_s25  ;;  %321 = vperm.xlu0 %513, %v308_v55  }
 0x175   : > { %334 = vrot.lane.b32.xlu1 %v308_v55, %s619_s27  ;;  %336 = vrot.lane.b32.xlu0 %v309_v53, %s619_s27 }
 0x1da   : > { %v331_v56 = vpop.permute.xlu0 %330 }
 0x1e7   : > { %v318_v57 = vpop.permute.xlu1 %317 }
 0x1e8   : > { %v333_v62 = vsel %vm267_vm5, %v318_v57, %v331_v56 }
 0x1e9   : > { %v343_v63 = vmax.f32 %v333_v62, %v309_v53  ;;  %v341_v10 = vmin.f32 %v333_v62, %v309_v53 }
 0x1eb   : > { %v313_v58 = vpop.permute.xlu0 %312 }
 0x1ec   : > { %v326_v59 = vpop.permute.xlu1 %325 }
 0x1f0   : > { %v329_v60 = vpop.permute.xlu1 %328  ;;  %v322_v61 = vpop.permute.xlu0 %321 }
 0x1f1   : > { %v332_v1 = vsel %vm267_vm5, %v313_v58, %v329_v60 }
 0x1f2   : > { %v342_v5 = vmax.f32 %v332_v1, %v308_v55  ;;  %v340_v11 = vmin.f32 %v332_v1, %v308_v55 }
 0x1f4   : > { %v335_v7 = vpop.permute.xlu1 %334  ;;  %v337_v8 = vpop.permute.xlu0 %336 }
 0x1f5   : > { %v338_v4 = vsel %vm274_vm7, %v322_v61, %v335_v7  ;;  %v339_v9 = vsel %vm274_vm7, %v326_v59, %v337_v8 }
 0x1f6   : > { %v344_v12 = vmin.f32 %v342_v5, %v338_v4  ;;  %v345_v13 = vmin.f32 %v343_v63, %v339_v9 }
 0x1f8   : > { %v346_v14 = vmax.f32 %v340_v11, %v344_v12  ;;  %v347_v3 = vmax.f32 %v341_v10, %v345_v13 }
 0x1fa   : > { %348 = vst [vmem:[%s134_s29] sm:$0xff] %v346_v14  ;;  %349 = vst [vmem:[%s134_s29 + $0x8] sm:$0xff] %v347_v3 }
 0x1fb   : > { %557 = shalt.err (!%p554_p1)
}
 0x1fc   : > { %s558_s21 = scalar_lea.hbm %s848_s10, 256  ;;  %s562_s26 = scalar_lea.hbm %s892_s1, 1024 }
 0x1fd   : > { %p559_p3 = scmp.ne.s32.totalorder %s848_s10, %s558_s21  ;;  %p563_p0 = scmp.lt.u32.totalorder %s848_s10, %s892_s1 }
 0x1fe   : > { %p564_p2 = scmp.lt.u32.totalorder %s562_s26, %s558_s21  ;;  %p566_p6 = scmp.lt.u32.totalorder %s558_s21, %s848_s10 }
 0x1ff   : > { %p560_p4 = pnand %p559_p3, %p899_p10 }
 0x200   : > { %p565_p7 = por %p564_p2, %p563_p0 }
 0x201   : > { %p561_p5 = pneg %p560_p4 }
 0x202   : > { %p567_p11 = por %p566_p6, %p565_p7 }
 0x204   : > { %p568_p12 = pnand %p567_p11, %p561_p5 }
 0x206   : > { %571 = shalt.err (!%p568_p12)
}
 0x207   : > { %s622_s25 = smov 128   ;;  %s623_s27 = smov 8  }
 0x208   : > { %455 = dma.vmem_to_hbm [thread:$0]  (%p899_p10), %s843_s2, 256, %s848_s10, %s351_s11, %s622_s25, %s622_s25, %s623_s27  }
 0x209 PF: > { %p466_p8 = scmp.ge.s32.totalorder %s610_s9, 2  ;;  %s379_s28 = sand.u32 1, %s598_s6  }
 0x20a   : > { %p900_p9 = scmp.ne.s32.totalorder %s897_s19, 0  ;;  %s380_s29 = scalar_lea.sflag [#allocation4], %s379_s28 }
 0x20c   : > { %p462_p13 = pnand %p466_p8, %p900_p9 }
 0x20e   : > { %593 = dma.done.wait (!%p462_p13), %s380_s29, 256  }
 0x20f   : > { %595 = vsyncadd (!%p462_p13), %s380_s29, 4294967040  ;;  %p14_p1 = scmp.ge.s32.totalorder %s659_s12, 6   ;;  %s901_s6 = smov %s602_s7 }
 0x210   : > { %s902_s7 = smov %s606_s8  ;;  %s903_s8 = smov %s671_s15 }
 0x211   : > { %s904_s9 = smov %s659_s12  ;;  %16 = sbr.rel (!%p14_p1) target bundleno = 5 (0x5), region = 69 }
 0x218   :  { %385 = vsyncpa [#allocation3], 1 }
 0x219   :  { %387 = vsyncpa [#allocation3 + $0x1], 1 }
 0x21a   :  { %388 = vsyncpa [#allocation4], 1 }
 0x21b   :  { %390 = vsyncpa [#allocation4 + $0x1], 1 }

</bundles_post_ra>
